<compile_context>
chip_gen: v7x
topology: tpu7x:2x2x1
jax: 0.10.0
libtpu: 0.0.40
codegen_flags: <defaults>
</compile_context>

<pallas_src>
import functools
from typing import Any, NamedTuple

import jax
import jax.numpy as jnp
from jax.experimental import pallas as pl
from jax.experimental.pallas import tpu as pltpu


# ---------------------------------------------------------------------------
# Kernels
# ---------------------------------------------------------------------------
def _eq_linear_kernel_multi_k(scale_ref, x_ref, w_ref, b_ref, o_ref, acc_ref,
                              *, compute_dtype):
    """Grid (M, N, K): f32 VMEM accumulator; scale + bias fused in epilogue."""
    k = pl.program_id(2)
    prod = jnp.dot(x_ref[...].astype(compute_dtype), w_ref[...],
                   preferred_element_type=jnp.float32)

    @pl.when(k == 0)
    def _():
        acc_ref[...] = prod                      # no zero-fill + reload

    @pl.when(k > 0)
    def _():
        acc_ref[...] += prod

    @pl.when(k == pl.num_programs(2) - 1)
    def _():
        o_ref[...] = (acc_ref[...] * scale_ref[0] + b_ref[...]).astype(o_ref.dtype)


def _eq_linear_kernel_single_k(scale_ref, x_ref, w_ref, b_ref, o_ref,
                               *, compute_dtype):
    """Single K step: no scratch accumulator needed."""
    prod = jnp.dot(x_ref[...].astype(compute_dtype), w_ref[...],
                   preferred_element_type=jnp.float32)
    o_ref[...] = (prod * scale_ref[0] + b_ref[...]).astype(o_ref.dtype)


# ---------------------------------------------------------------------------
# Tiling / hardware helpers
# ---------------------------------------------------------------------------
def _round_up(v, m):
    return ((v + m - 1) // m) * m


def _pad_and_tile(dim, align, cap):
    """(padded_dim, tile) with tile | padded_dim, tile % align == 0, minimal pad."""
    p = _round_up(dim, align)
    if p <= cap:
        return p, p
    ntiles = -(-p // cap)                         # ceil(p / cap)
    tile = _round_up(-(-p // ntiles), align)      # minimal tile covering p
    return tile * ntiles, tile


def _hw_config():
    """Best-effort generation detection (never fails)."""
    is_v7x = False
    vmem_bytes = 128 * 1024 * 1024
    try:
        kind = jax.devices()[0].device_kind.lower()
        is_v7x = ("v7" in kind) or ("7x" in kind)
    except Exception:
        pass
    try:
        vmem_bytes = int(pltpu.get_tpu_info().vmem_capacity_bytes)
    except Exception:
        pass
    if is_v7x:
        vmem_bytes = min(vmem_bytes, 64 * 1024 * 1024)
    return is_v7x, vmem_bytes


def _default_tile_caps(is_v7x, vmem_bytes):
    """(TM_CAP, TN_CAP, TK_CAP), scoped-VMEM budget."""
    if is_v7x or vmem_bytes <= 64 * 1024 * 1024:
        # v7x: 64 MiB physical VMEM, 2 TCs — smaller M cap makes it easier to
        # expose >=2 parallel output tiles; keep scoped budget <= 48 MiB.
        return (256, 512, 1024), 48 * 1024 * 1024
    # v5e / v6e: 128 MiB physical.
    return (512, 512, 1024), 96 * 1024 * 1024


# ---------------------------------------------------------------------------
# Parameter preparation (pad/cast the weight ONCE, cache it)
# ---------------------------------------------------------------------------
class EqLinearParams(NamedTuple):
    w: Any            # pallas: (Kp, Np) padded, comp dtype ; fallback: (c_in, c_out) f32
    bias: Any         # pallas: (1, Np) f32                 ; fallback: (c_out,) f32
    scale: Any        # (1,) f32
    c_in: int
    c_out: int
    comp_dtype: Any
    use_pallas: bool
    Kp: int
    Np: int
    tk: int
    tn: int
    tm_cap: int
    align_m: int
    is_v7x: bool
    vmem_budget: int


def prepare_equalized_linear(w_stored, bias, scale, *, use_bf16=True,
                             tile_caps=None):
    """w_stored: (c_out, c_in), torch layout of the stored (W / scale) weight."""
    c_out, c_in = w_stored.shape
    comp_dtype = jnp.bfloat16 if use_bf16 else jnp.float32
    is_v7x, vmem_bytes = _hw_config()
    caps, vmem_budget = _default_tile_caps(is_v7x, vmem_bytes)
    if tile_caps is not None:
        caps = tile_caps
    tm_cap, tn_cap, tk_cap = caps
    align_m = 8 if comp_dtype == jnp.float32 else 16

    scale_arr = jnp.asarray(scale, jnp.float32).reshape(1)
    # Tiny layers: padding to (8,128) plus pallas_call overhead dominates.
    use_pallas = not (c_in < 128 and c_out < 128)

    w_t = jnp.asarray(w_stored).T                       # (c_in, c_out)
    if not use_pallas:
        return EqLinearParams(
            w=w_t.astype(jnp.float32), bias=jnp.asarray(bias, jnp.float32),
            scale=scale_arr, c_in=c_in, c_out=c_out, comp_dtype=comp_dtype,
            use_pallas=False, Kp=c_in, Np=c_out, tk=c_in, tn=c_out,
            tm_cap=tm_cap, align_m=align_m, is_v7x=is_v7x,
            vmem_budget=vmem_budget)

    Kp, tk = _pad_and_tile(c_in, 128, tk_cap)
    Np, tn = _pad_and_tile(c_out, 128, tn_cap)          # lane-dense output
    w_pad = jnp.pad(w_t.astype(comp_dtype), ((0, Kp - c_in), (0, Np - c_out)))
    b_pad = jnp.pad(jnp.asarray(bias, jnp.float32).reshape(1, -1),
                    ((0, 0), (0, Np - c_out)))
    return EqLinearParams(
        w=w_pad, bias=b_pad, scale=scale_arr, c_in=c_in, c_out=c_out,
        comp_dtype=comp_dtype, use_pallas=True, Kp=Kp, Np=Np, tk=tk, tn=tn,
        tm_cap=tm_cap, align_m=align_m, is_v7x=is_v7x, vmem_budget=vmem_budget)


# ---------------------------------------------------------------------------
# Forward
# ---------------------------------------------------------------------------
def equalized_linear(x, params: EqLinearParams, out_dtype=None):
    """x: (B, c_in). Returns y = (x * scale) @ W_stored.T + bias, shape (B, c_out)."""
    B, c_in = x.shape
    assert c_in == params.c_in, "c_in mismatch"
    out_dtype = jnp.dtype(out_dtype) if out_dtype is not None else x.dtype

    if not params.use_pallas:
        y = (x.astype(jnp.float32) * params.scale[0]) @ params.w + params.bias[None, :]
        return y.astype(out_dtype)

    Kp, Np, tk, tn = params.Kp, params.Np, params.tk, params.tn
    Bp, tm = _pad_and_tile(B, params.align_m, params.tm_cap)

    # v7x: guarantee >=2 "parallel" output tiles so the 2nd TensorCore works.
    if params.is_v7x and (Bp // tm) * (Np // tn) == 1:
        if tn % 256 == 0:
            tn //= 2
        elif tm % (2 * params.align_m) == 0:
            tm //= 2

    # x stays in its original dtype (cast to comp_dtype in-kernel); jnp.pad fuses.
    xp = x if (Bp == B and Kp == c_in) else jnp.pad(
        x, ((0, Bp - B), (0, Kp - c_in)))

    n_k = Kp // tk
    grid = (Bp // tm, Np // tn, n_k)

    x_bytes = jnp.dtype(xp.dtype).itemsize
    w_bytes = jnp.dtype(params.comp_dtype).itemsize
    o_bytes = jnp.dtype(out_dtype).itemsize
    acc_bytes = tm * tn * 4 if n_k > 1 else 0
    working_set = (2 * tm * tk * x_bytes + 2 * tk * tn * w_bytes
                   + 2 * tm * tn * o_bytes + 2 * tn * 4 + acc_bytes)
    vmem_limit = int(min(params.vmem_budget,
                         max(32 * 1024 * 1024, 2 * working_set)))

    if n_k > 1:
        kernel = functools.partial(_eq_linear_kernel_multi_k,
                                   compute_dtype=params.comp_dtype)
        scratch = [pltpu.VMEM((tm, tn), jnp.float32)]
    else:
        kernel = functools.partial(_eq_linear_kernel_single_k,
                                   compute_dtype=params.comp_dtype)
        scratch = []

    grid_spec = pltpu.PrefetchScalarGridSpec(
        num_scalar_prefetch=1,                           # scale in SMEM
        grid=grid,
        in_specs=[
            pl.BlockSpec((tm, tk), lambda i, j, k, s: (i, k)),   # x tile
            pl.BlockSpec((tk, tn), lambda i, j, k, s: (k, j)),   # w tile
            pl.BlockSpec((1, tn), lambda i, j, k, s: (0, j)),    # bias tile
        ],
        out_specs=pl.BlockSpec((tm, tn), lambda i, j, k, s: (i, j)),
        scratch_shapes=scratch,
    )

    cost = pl.CostEstimate(
        flops=2 * Bp * Kp * Np,
        transcendentals=0,
        bytes_accessed=(Bp * Kp * x_bytes + Kp * Np * w_bytes + Np * 4
                        + Bp * Np * o_bytes),
    )

    out = pl.pallas_call(
        kernel,
        out_shape=jax.ShapeDtypeStruct((Bp, Np), out_dtype),
        grid_spec=grid_spec,
        compiler_params=pltpu.CompilerParams(
            dimension_semantics=("parallel", "parallel", "arbitrary"),
            vmem_limit_bytes=vmem_limit),
        cost_estimate=cost,
    )(params.scale, xp, params.w, params.bias)

    if Bp == B and Np == params.c_out:
        return out
    return out[:B, :params.c_out]


# ---------------------------------------------------------------------------
# Module init (deterministic re-implementation of EqualizedLinear.__init__)
# ---------------------------------------------------------------------------
def init_equalized_linear(key, c_in, c_out):
    """kaiming_normal_ with a=calculate_gain('linear')=1 (leaky_relu fan_in basis)
    gives std = sqrt(2/(1+a^2))/sqrt(fan_in) = 1/sqrt(c_in)."""
    std = 1.0 / jnp.sqrt(jnp.asarray(c_in, jnp.float32))
    w = jax.random.normal(key, (c_out, c_in), dtype=jnp.float32) * std  # torch layout
    scale = jnp.sqrt(jnp.mean(w ** 2))
    w_stored = w / scale                 # module stores W / scale
    bias = jnp.zeros((c_out,), jnp.float32)
    return w_stored, bias, scale


def _reference(x, w_stored, bias, scale):
    return (x * scale) @ w_stored.T + bias[None, :]


if __name__ == "__main__":
    key = jax.random.PRNGKey(0)

    # --- Case 1: tiny layer (c_in, c_out < 128) -> XLA fallback path --------
    k1, k2, key = jax.random.split(key, 3)
    B1, ci1, co1 = 4, 32, 64
    w1, b1, s1 = init_equalized_linear(k1, ci1, co1)
    x1 = jax.random.normal(k2, (B1, ci1), dtype=jnp.float32)
    p1 = prepare_equalized_linear(w1, b1, s1, use_bf16=False)
    y1 = jax.block_until_ready(equalized_linear(x1, p1))
    assert y1.shape == (B1, co1)
    assert jnp.allclose(y1, _reference(x1, w1, b1, s1), atol=1e-4, rtol=1e-4), \
        "tiny-layer fallback mismatch"

    # --- Case 2: Pallas path, f32, unaligned dims (pad + slice), single-K ---
    k3, k4, key = jax.random.split(key, 3)
    B2, ci2, co2 = 10, 200, 136
    w2, b2, s2 = init_equalized_linear(k3, ci2, co2)
    x2 = jax.random.normal(k4, (B2, ci2), dtype=jnp.float32)
    p2 = prepare_equalized_linear(w2, b2, s2, use_bf16=False)
    y2 = jax.block_until_ready(equalized_linear(x2, p2))
    assert y2.shape == (B2, co2)
    assert jnp.allclose(y2, _reference(x2, w2, b2, s2), atol=1e-4, rtol=1e-4), \
        "f32 pallas path mismatch"

    # --- Case 3: Pallas path, bf16 operands, small tile caps forcing a
    #     (1, 2, 2) grid: multi-K accumulation + multiple parallel N tiles ---
    k5, k6 = jax.random.split(key)
    B3, ci3, co3 = 32, 512, 256
    w3, b3, s3 = init_equalized_linear(k5, ci3, co3)
    x3 = jax.random.normal(k6, (B3, ci3), dtype=jnp.float32)
    p3 = prepare_equalized_linear(w3, b3, s3, use_bf16=True,
                                  tile_caps=(128, 128, 256))
    y3 = jax.block_until_ready(equalized_linear(x3, p3))
    assert y3.shape == (B3, co3)
    assert jnp.allclose(y3, _reference(x3, w3, b3, s3), atol=3e-2, rtol=3e-2), \
        "bf16 pallas path mismatch"

    print("KERNEL_OK")
</pallas_src>

<mosaic_0001>
module attributes {stable_mosaic.version = 11 : i64} {
  func.func @_eq_linear_kernel_single_k(%arg0: i32, %arg1: i32, %arg2: i32, %arg3: memref<1xf32, #tpu.memory_space<smem>>, %arg4: memref<16x256xf32, #tpu.memory_space<vmem>>, %arg5: memref<256x256xf32, #tpu.memory_space<vmem>>, %arg6: memref<1x256xf32, #tpu.memory_space<vmem>>, %arg7: memref<16x256xf32, #tpu.memory_space<vmem>>) attributes {dimension_semantics = [#tpu.dimension_semantics<parallel>, #tpu.dimension_semantics<parallel>, #tpu.dimension_semantics<arbitrary>], iteration_bounds = array<i64: 1, 1, 1>, scalar_prefetch = 1 : i64, scratch_operands = 0 : i64, tpu.core_type = #tpu.core_type<tc>, window_params = [{transform_indices = @transform_0, window_bounds = array<i64: 16, 256>}, {transform_indices = @transform_1, window_bounds = array<i64: 256, 256>}, {transform_indices = @transform_2, window_bounds = array<i64: 1, 256>}, {transform_indices = @transform_3, window_bounds = array<i64: 16, 256>}]} {
    %c0 = arith.constant 0 : index
    %c0_0 = arith.constant 0 : index
    %0 = vector.load %arg4[%c0, %c0_0] : memref<16x256xf32, #tpu.memory_space<vmem>>, vector<16x256xf32>
    %c0_1 = arith.constant 0 : index
    %c0_2 = arith.constant 0 : index
    %1 = vector.load %arg5[%c0_1, %c0_2] : memref<256x256xf32, #tpu.memory_space<vmem>>, vector<256x256xf32>
    %cst = arith.constant dense<0.000000e+00> : vector<16x256xf32>
    %2 = tpu.matmul %0, %1, %cst {dimension_numbers = #tpu.dot_dimension_numbers<[1], [0], [0], [1], [0, 0, 1, 1], [], []>} : vector<16x256xf32>, vector<256x256xf32>, vector<16x256xf32> -> vector<16x256xf32>
    %c0_3 = arith.constant 0 : index
    %3 = memref.load %arg3[%c0_3] : memref<1xf32, #tpu.memory_space<smem>>
    %4 = vector.broadcast %3 : f32 to vector<16x256xf32>
    %5 = arith.mulf %2, %4 : vector<16x256xf32>
    %c0_4 = arith.constant 0 : index
    %c0_5 = arith.constant 0 : index
    %6 = vector.load %arg6[%c0_4, %c0_5] : memref<1x256xf32, #tpu.memory_space<vmem>>, vector<1x256xf32>
    %7 = vector.broadcast %6 : vector<1x256xf32> to vector<16x256xf32>
    %8 = arith.addf %5, %7 : vector<16x256xf32>
    %c0_6 = arith.constant 0 : index
    %c0_7 = arith.constant 0 : index
    %9 = vector.load %arg7[%c0_6, %c0_7] : memref<16x256xf32, #tpu.memory_space<vmem>>, vector<16x256xf32>
    tpu.vector_store %arg7[%c0_6, %c0_7], %8 {strides = array<i32>} : memref<16x256xf32, #tpu.memory_space<vmem>>, vector<16x256xf32>,
    return
  }
  func.func @transform_0(%arg0: i32, %arg1: i32, %arg2: i32, %arg3: memref<1xf32, #tpu.memory_space<smem>>) -> (i32, i32) {
    %c0_i32 = arith.constant 0 : i32
    return %arg0, %arg2 : i32, i32
  }
  func.func @transform_1(%arg0: i32, %arg1: i32, %arg2: i32, %arg3: memref<1xf32, #tpu.memory_space<smem>>) -> (i32, i32) {
    %c0_i32 = arith.constant 0 : i32
    return %arg2, %arg1 : i32, i32
  }
  func.func @transform_2(%arg0: i32, %arg1: i32, %arg2: i32, %arg3: memref<1xf32, #tpu.memory_space<smem>>) -> (i32, i32) {
    %c0_i32 = arith.constant 0 : i32
    %c0_i32_0 = arith.constant 0 : i32
    return %c0_i32, %arg1 : i32, i32
  }
  func.func @transform_3(%arg0: i32, %arg1: i32, %arg2: i32, %arg3: memref<1xf32, #tpu.memory_space<smem>>) -> (i32, i32) {
    %c0_i32 = arith.constant 0 : i32
    return %arg0, %arg1 : i32, i32
  }
}

</mosaic_0001>

<bundles_post_ra>
// kernel: tpu_custom_call.1
= control target key start
LH: loop header
LB: loop body
LE: loop exit
PB: predicated region body
PF: predicated region fallthrough
CT: control target
= control target key end

     0   :  { %10 = vsyncpa [#allocation5], 0  ;;  %s488_s0 = inlined_call_operand.<no memory space> [shape: f32[1], index: 0, kind: input, shape index: {}]   ;;  %s489_s1 = inlined_call_operand.hbm [shape: f32[16,256], index: 1, kind: input, shape index: {}]   ;;  %s490_s2 = inlined_call_operand.hbm [shape: f32[256,256], index: 2, kind: input, shape index: {}]   ;;  %s491_s3 = inlined_call_operand.vmem [shape: f32[1,256], index: 3, kind: input, shape index: {}]   ;;  %s492_s4 = inlined_call_operand.hbm [shape: f32[16,256], index: 4, kind: output, shape index: {}]  }
   0x1   :  { %11 = vsyncpa [#allocation8], 0 }
   0x2   :  { %12 = vsyncpa [#allocation6], 0  ;;  %s407_s15 = smov [#allocation4]   ;;  %s335_s19 = scalar_lea.hbm %s489_s1, 512 }
   0x3   :  { %s18_s16 = sshll.u32 %s407_s15, 4  ;;  %p336_p0 = scmp.ne.s32.totalorder %s489_s1, %s335_s19  ;;  %s19_s16 = int_to_ptr.vmem [resolvable:$true] %s18_s16 }
   0x4   :  { %p339_p1 = scmp.lt.u32.totalorder %s335_s19, %s489_s1 }
   0x6   :  { %p341_p2 = pnand %p339_p1, %p336_p0 }
   0x8   :  { %344 = shalt.err (!%p341_p2)
}
   0x9   :  { %s345_s24 = scalar_lea.vmem %s19_s16, 512  ;;  %p350_p4 = scmp.lt.s32.totalorder %s19_s16, %s19_s16 }
   0xa   :  { %p346_p3 = scmp.ne.s32.totalorder %s19_s16, %s345_s24  ;;  %p351_p5 = scmp.lt.s32.totalorder %s345_s24, %s345_s24 }
   0xc   :  { %p352_p6 = por %p351_p5, %p350_p4 }
   0xe   :  { %p353_p7 = pnand %p352_p6, %p346_p3 }
  0x10   :  { %356 = shalt.err (!%p353_p7)
}
  0x11   :  { %s408_s25 = smov 256   ;;  %s409_s26 = smov 16  }
  0x12   :  { %24 = dma.hbm_to_vmem [thread:$0]  %s489_s1, 512, %s19_s16, [#allocation5], %s408_s25, %s408_s25, %s409_s26  }
  0x13   :  { %s410_s29 = smov [#allocation7]   ;;  %s357_s7 = scalar_lea.hbm %s490_s2, 8192 }
  0x14   :  { %s30_s30 = sshll.u32 %s410_s29, 4  ;;  %p358_p8 = scmp.ne.s32.totalorder %s490_s2, %s357_s7  ;;  %s31_s30 = int_to_ptr.vmem [resolvable:$true] %s30_s30 }
  0x15   :  { %p361_p9 = scmp.lt.u32.totalorder %s357_s7, %s490_s2 }
  0x17   :  { %p363_p10 = pnand %p361_p9, %p358_p8 }
  0x19   :  { %366 = shalt.err (!%p363_p10)
}
  0x1a   :  { %s367_s12 = scalar_lea.vmem %s31_s30, 8192  ;;  %p372_p12 = scmp.lt.s32.totalorder %s31_s30, %s31_s30 }
  0x1b   :  { %p368_p11 = scmp.ne.s32.totalorder %s31_s30, %s367_s12  ;;  %p373_p13 = scmp.lt.s32.totalorder %s367_s12, %s367_s12 }
  0x1d   :  { %p374_p0 = por %p373_p13, %p372_p12 }
  0x1f   :  { %p375_p1 = pnand %p374_p0, %p368_p11 }
  0x21   :  { %378 = shalt.err (!%p375_p1)
}
  0x22   :  { %36 = dma.hbm_to_vmem [thread:$0]  %s490_s2, 8192, %s31_s30, [#allocation8], %s408_s25, %s408_s25, %s409_s26  }
  0x23   :  { %401 = dma.done.wait [#allocation5], 512  }
  0x24   :  { %402 = vsyncadd [#allocation5], 4294966784 }
  0x25   :  { %403 = dma.done.wait [#allocation8], 8192  }
  0x26   :  { %404 = vsyncadd [#allocation8], 4294959104  ;;  %v50_v0 = vld [vmem:[#allocation7 + $0x8] sm:$0xff]  ;;  %v52_v1 = vld [vmem:[#allocation7 + $0x18] sm:$0xff]  ;;  %s411_s17 = smov [#allocation9]  }
  0x27   :  { %v49_v2 = vld [vmem:[#allocation7] sm:$0xff]  ;;  %v234_v3 = vpack.c.bf16 %v52_v1, %v50_v0  ;;  %v51_v4 = vld [vmem:[#allocation7 + $0x10] sm:$0xff]  ;;  %v54_v5 = vld [vmem:[#allocation7 + $0x28] sm:$0xff]  ;;  %s221_s18 = sshll.u32 %s411_s17, 4  ;;  %s222_s18 = int_to_ptr.vmem [resolvable:$true] %s221_s18 }
  0x28   :  { %v56_v6 = vld [vmem:[#allocation7 + $0x38] sm:$0xff]  ;;  %v236_v7 = vpack.c.bf16 %v51_v4, %v49_v2  ;;  %v53_v9 = vld [vmem:[#allocation7 + $0x20] sm:$0xff]  ;;  %v55_v10 = vld [vmem:[#allocation7 + $0x30] sm:$0xff]  ;;  %p384_p3 = scmp.lt.s32.totalorder %s222_s18, %s222_s18 }
  0x29   :  { %v238_v8 = vpack.c.bf16 %v56_v6, %v54_v5  ;;  %v58_v11 = vld [vmem:[#allocation7 + $0x48] sm:$0xff]  ;;  %235 = vmatprep.subr.bf16.mxu0 %v234_v3  ;;  %298 = vmatprep.subr.bf16.mxu1 %v234_v3  ;;  %v60_v12 = vld [vmem:[#allocation7 + $0x58] sm:$0xff]  ;;  %v240_v13 = vpack.c.bf16 %v55_v10, %v53_v9  ;;  %v57_v15 = vld [vmem:[#allocation7 + $0x40] sm:$0xff] }
  0x2a   :  { %237 = vmatpush1.bf16.msra.mxu0 %v236_v7  ;;  %314 = vmatpush1.bf16.msra.mxu1 %v236_v7  ;;  %v242_v14 = vpack.c.bf16 %v60_v12, %v58_v11  ;;  %v59_v16 = vld [vmem:[#allocation7 + $0x50] sm:$0xff]  ;;  %v62_v17 = vld [vmem:[#allocation7 + $0x68] sm:$0xff]  ;;  %v64_v18 = vld [vmem:[#allocation7 + $0x78] sm:$0xff] }
  0x2b   :  { %239 = vmatprep.subr.bf16.mxu0 %v238_v8  ;;  %299 = vmatprep.subr.bf16.mxu1 %v238_v8  ;;  %v244_v19 = vpack.c.bf16 %v59_v16, %v57_v15  ;;  %v246_v20 = vpack.c.bf16 %v64_v18, %v62_v17  ;;  %v61_v21 = vld [vmem:[#allocation7 + $0x60] sm:$0xff]  ;;  %v63_v22 = vld [vmem:[#allocation7 + $0x70] sm:$0xff]  ;;  %v66_v23 = vld [vmem:[#allocation7 + $0x88] sm:$0xff] }
  0x2c   :  { %v68_v24 = vld [vmem:[#allocation7 + $0x98] sm:$0xff]  ;;  %v248_v25 = vpack.c.bf16 %v63_v22, %v61_v21  ;;  %v65_v27 = vld [vmem:[#allocation7 + $0x80] sm:$0xff]  ;;  %v67_v28 = vld [vmem:[#allocation7 + $0x90] sm:$0xff] }
  0x2d   :  { %v250_v26 = vpack.c.bf16 %v68_v24, %v66_v23  ;;  %v70_v29 = vld [vmem:[#allocation7 + $0xa8] sm:$0xff]  ;;  %v72_v30 = vld [vmem:[#allocation7 + $0xb8] sm:$0xff]  ;;  %v252_v31 = vpack.c.bf16 %v67_v28, %v65_v27  ;;  %v69_v33 = vld [vmem:[#allocation7 + $0xa0] sm:$0xff] }
  0x2e   :  { %241 = vmatpush1.bf16.msra.mxu0 %v240_v13  ;;  %315 = vmatpush1.bf16.msra.mxu1 %v240_v13  ;;  %v254_v32 = vpack.c.bf16 %v72_v30, %v70_v29  ;;  %v71_v34 = vld [vmem:[#allocation7 + $0xb0] sm:$0xff]  ;;  %v74_v35 = vld [vmem:[#allocation7 + $0xc8] sm:$0xff]  ;;  %v76_v36 = vld [vmem:[#allocation7 + $0xd8] sm:$0xff] }
  0x2f   :  { %243 = vmatprep.subr.bf16.mxu0 %v242_v14  ;;  %300 = vmatprep.subr.bf16.mxu1 %v242_v14  ;;  %v256_v37 = vpack.c.bf16 %v71_v34, %v69_v33  ;;  %v73_v38 = vld [vmem:[#allocation7 + $0xc0] sm:$0xff]  ;;  %v258_v39 = vpack.c.bf16 %v76_v36, %v74_v35  ;;  %v75_v40 = vld [vmem:[#allocation7 + $0xd0] sm:$0xff]  ;;  %v46_v41 = vld [vmem:[#allocation4 + $0x8] sm:$0xff]  ;;  %v198_v36 = vlaneseq }
  0x30   :  { %v48_v42 = vld [vmem:[#allocation4 + $0x18] sm:$0xff]  ;;  %v78_v43 = vld [vmem:[#allocation7 + $0xe8] sm:$0xff]  ;;  %177 = vmatprep.mubr.f32.mxu0 %v46_v41  ;;  %v260_v45 = vpack.c.bf16 %v75_v40, %v73_v38  ;;  %v77_v47 = vld [vmem:[#allocation7 + $0xe0] sm:$0xff]  ;;  %v191_v41 = vstv %s488_s0  ;;  %s379_s0 = scalar_lea.vmem %s222_s18, 512 }
  0x31   :  { %v80_v44 = vld [vmem:[#allocation7 + $0xf8] sm:$0xff]  ;;  %183 = vmatprep.mubr.f32.mxu1 %v48_v42  ;;  %v79_v48 = vld [vmem:[#allocation7 + $0xf0] sm:$0xff]  ;;  %v82_v49 = vld [vmem:[#allocation7 + $0x108] sm:$0xff]  ;;  %p380_p2 = scmp.ne.s32.totalorder %s222_s18, %s379_s0  ;;  %p385_p4 = scmp.lt.s32.totalorder %s379_s0, %s379_s0 }
  0x32   :  { %245 = vmatpush1.bf16.msra.mxu0 %v244_v19  ;;  %316 = vmatpush1.bf16.msra.mxu1 %v244_v19  ;;  %v262_v46 = vpack.c.bf16 %v80_v44, %v78_v43  ;;  %v84_v50 = vld [vmem:[#allocation7 + $0x118] sm:$0xff]  ;;  %v264_v51 = vpack.c.bf16 %v79_v48, %v77_v47  ;;  %v81_v53 = vld [vmem:[#allocation7 + $0x100] sm:$0xff]  ;;  %v83_v54 = vld [vmem:[#allocation7 + $0x110] sm:$0xff] }
  0x33   :  { %247 = vmatprep.subr.bf16.mxu0 %v246_v20  ;;  %301 = vmatprep.subr.bf16.mxu1 %v246_v20  ;;  %v266_v52 = vpack.c.bf16 %v84_v50, %v82_v49  ;;  %v86_v55 = vld [vmem:[#allocation7 + $0x128] sm:$0xff]  ;;  %v88_v56 = vld [vmem:[#allocation7 + $0x138] sm:$0xff]  ;;  %v268_v57 = vpack.c.bf16 %v83_v54, %v81_v53  ;;  %v85_v59 = vld [vmem:[#allocation7 + $0x120] sm:$0xff]  ;;  %p386_p5 = por %p385_p4, %p384_p3 }
  0x34   :  { %v270_v58 = vpack.c.bf16 %v88_v56, %v86_v55  ;;  %v87_v60 = vld [vmem:[#allocation7 + $0x130] sm:$0xff]  ;;  %v90_v61 = vld [vmem:[#allocation7 + $0x148] sm:$0xff]  ;;  %v92_v62 = vld [vmem:[#allocation7 + $0x158] sm:$0xff] }
  0x35   :  { %v272_v63 = vpack.c.bf16 %v87_v60, %v85_v59  ;;  %v274_v0 = vpack.c.bf16 %v92_v62, %v90_v61  ;;  %v89_v1 = vld [vmem:[#allocation7 + $0x140] sm:$0xff]  ;;  %v91_v2 = vld [vmem:[#allocation7 + $0x150] sm:$0xff]  ;;  %v94_v3 = vld [vmem:[#allocation7 + $0x168] sm:$0xff]  ;;  %p387_p6 = pnand %p386_p5, %p380_p2 }
  0x36   :  { %249 = vmatpush1.bf16.msra.mxu0 %v248_v25  ;;  %317 = vmatpush1.bf16.msra.mxu1 %v248_v25  ;;  %v96_v4 = vld [vmem:[#allocation7 + $0x178] sm:$0xff]  ;;  %v276_v5 = vpack.c.bf16 %v91_v2, %v89_v1  ;;  %v93_v7 = vld [vmem:[#allocation7 + $0x160] sm:$0xff]  ;;  %v95_v8 = vld [vmem:[#allocation7 + $0x170] sm:$0xff] }
  0x37   :  { %251 = vmatprep.subr.bf16.mxu0 %v250_v26  ;;  %302 = vmatprep.subr.bf16.mxu1 %v250_v26  ;;  %v278_v6 = vpack.c.bf16 %v96_v4, %v94_v3  ;;  %v98_v9 = vld [vmem:[#allocation7 + $0x188] sm:$0xff]  ;;  %v100_v10 = vld [vmem:[#allocation7 + $0x198] sm:$0xff]  ;;  %v280_v11 = vpack.c.bf16 %v95_v8, %v93_v7  ;;  %v97_v13 = vld [vmem:[#allocation7 + $0x180] sm:$0xff] }
  0x38   :  { %v282_v12 = vpack.c.bf16 %v100_v10, %v98_v9  ;;  %v99_v14 = vld [vmem:[#allocation7 + $0x190] sm:$0xff]  ;;  %v102_v15 = vld [vmem:[#allocation7 + $0x1a8] sm:$0xff]  ;;  %v104_v16 = vld [vmem:[#allocation7 + $0x1b8] sm:$0xff] }
  0x39   :  { %v284_v17 = vpack.c.bf16 %v99_v14, %v97_v13  ;;  %v286_v18 = vpack.c.bf16 %v104_v16, %v102_v15  ;;  %v101_v19 = vld [vmem:[#allocation7 + $0x1a0] sm:$0xff]  ;;  %v103_v20 = vld [vmem:[#allocation7 + $0x1b0] sm:$0xff]  ;;  %v106_v21 = vld [vmem:[#allocation7 + $0x1c8] sm:$0xff] }
  0x3a   :  { %253 = vmatpush1.bf16.msra.mxu0 %v252_v31  ;;  %318 = vmatpush1.bf16.msra.mxu1 %v252_v31  ;;  %v108_v22 = vld [vmem:[#allocation7 + $0x1d8] sm:$0xff]  ;;  %v288_v23 = vpack.c.bf16 %v103_v20, %v101_v19  ;;  %v105_v25 = vld [vmem:[#allocation7 + $0x1c0] sm:$0xff]  ;;  %v107_v26 = vld [vmem:[#allocation7 + $0x1d0] sm:$0xff] }
  0x3b   :  { %255 = vmatprep.subr.bf16.mxu0 %v254_v32  ;;  %303 = vmatprep.subr.bf16.mxu1 %v254_v32  ;;  %v290_v24 = vpack.c.bf16 %v108_v22, %v106_v21  ;;  %v110_v27 = vld [vmem:[#allocation7 + $0x1e8] sm:$0xff]  ;;  %v112_v28 = vld [vmem:[#allocation7 + $0x1f8] sm:$0xff]  ;;  %v292_v29 = vpack.c.bf16 %v107_v26, %v105_v25  ;;  %v109_v31 = vld [vmem:[#allocation7 + $0x1e0] sm:$0xff] }
  0x3c   :  { %v294_v30 = vpack.c.bf16 %v112_v28, %v110_v27  ;;  %v111_v32 = vld [vmem:[#allocation7 + $0x1f0] sm:$0xff]  ;;  %v45_v34 = vld [vmem:[#allocation4] sm:$0xff] }
  0x3d   :  { %v296_v33 = vpack.c.bf16 %v111_v32, %v109_v31  ;;  %v47_v35 = vld [vmem:[#allocation4 + $0x10] sm:$0xff] }
  0x3e   :  { %257 = vmatpush1.bf16.msra.mxu0 %v256_v37  ;;  %319 = vmatpush1.bf16.msra.mxu1 %v256_v37  ;;  %v199_v37 = vshrl.u32 %v198_v36, 7 }
  0x3f   :  { %259 = vmatprep.subr.bf16.mxu0 %v258_v39  ;;  %304 = vmatprep.subr.bf16.mxu1 %v258_v39  ;;  %v196_v39 = vld [vmem:[%s491_s3] sm:$0x3] }
  0x40   :  { %v200_v38 = vsub.s32 0, %v199_v37  ;;  %v204_v40 = vsub.s32 1, %v199_v37 }
  0x42   :  { %261 = vmatpush1.bf16.msra.mxu0 %v260_v45  ;;  %320 = vmatpush1.bf16.msra.mxu1 %v260_v45  ;;  %v201_v42 = vrot.slane %v196_v39, %v200_v38  ;;  %v205_v45 = vrot.slane %v196_v39, %v204_v40 }
  0x43   :  { %263 = vmatprep.subr.bf16.mxu0 %v262_v46  ;;  %305 = vmatprep.subr.bf16.mxu1 %v262_v46 }
  0x46   :  { %265 = vmatpush1.bf16.msra.mxu0 %v264_v51  ;;  %321 = vmatpush1.bf16.msra.mxu1 %v264_v51 }
  0x47   :  { %267 = vmatprep.subr.bf16.mxu0 %v266_v52  ;;  %306 = vmatprep.subr.bf16.mxu1 %v266_v52 }
  0x4a   :  { %269 = vmatpush1.bf16.msra.mxu0 %v268_v57  ;;  %322 = vmatpush1.bf16.msra.mxu1 %v268_v57 }
  0x4b   :  { %271 = vmatprep.subr.bf16.mxu0 %v270_v58  ;;  %307 = vmatprep.subr.bf16.mxu1 %v270_v58 }
  0x4e   :  { %273 = vmatpush1.bf16.msra.mxu0 %v272_v63  ;;  %323 = vmatpush1.bf16.msra.mxu1 %v272_v63 }
  0x4f   :  { %275 = vmatprep.subr.bf16.mxu0 %v274_v0  ;;  %308 = vmatprep.subr.bf16.mxu1 %v274_v0 }
  0x52   :  { %277 = vmatpush1.bf16.msra.mxu0 %v276_v5  ;;  %324 = vmatpush1.bf16.msra.mxu1 %v276_v5 }
  0x53   :  { %279 = vmatprep.subr.bf16.mxu0 %v278_v6  ;;  %309 = vmatprep.subr.bf16.mxu1 %v278_v6 }
  0x56   :  { %281 = vmatpush1.bf16.msra.mxu0 %v280_v11  ;;  %325 = vmatpush1.bf16.msra.mxu1 %v280_v11 }
  0x57   :  { %283 = vmatprep.subr.bf16.mxu0 %v282_v12  ;;  %310 = vmatprep.subr.bf16.mxu1 %v282_v12 }
  0x5a   :  { %285 = vmatpush1.bf16.msra.mxu0 %v284_v17  ;;  %326 = vmatpush1.bf16.msra.mxu1 %v284_v17 }
  0x5b   :  { %287 = vmatprep.subr.bf16.mxu0 %v286_v18  ;;  %311 = vmatprep.subr.bf16.mxu1 %v286_v18 }
  0x5e   :  { %289 = vmatpush1.bf16.msra.mxu0 %v288_v23  ;;  %327 = vmatpush1.bf16.msra.mxu1 %v288_v23 }
  0x5f   :  { %291 = vmatprep.subr.bf16.mxu0 %v290_v24  ;;  %312 = vmatprep.subr.bf16.mxu1 %v290_v24 }
  0x62   :  { %293 = vmatpush1.bf16.msra.mxu0 %v292_v29  ;;  %328 = vmatpush1.bf16.msra.mxu1 %v292_v29 }
  0x63   :  { %295 = vmatprep.subr.bf16.mxu0 %v294_v30  ;;  %313 = vmatprep.subr.bf16.mxu1 %v294_v30 }
  0x66   :  { %297 = vmatpush1.bf16.msra.mxu0 %v296_v33  ;;  %329 = vmatpush1.bf16.msra.mxu1 %v296_v33 }
  0x69   :  { %178 = vmatmul.mubr.f32.vlgmr.msra.gmra.mrb[0].mxu0 %v45_v34  ;;  %184 = vmatmul.mubr.f32.vlgmr.msra.gmra.mrb[0].mxu1 %v47_v35 }
 0x13c   :  { %v179_v43 = vpop.f32.mrb[0].mxu0  ;;  %v185_v44 = vpop.f32.mrb[0].mxu1 }
 0x13d   :  { %v192_v46 = vmul.f32 %v191_v41, %v179_v43  ;;  %v194_v47 = vmul.f32 %v191_v41, %v185_v44  ;;  %v181_v48 = vpop.f32.mrb[1].mxu0  ;;  %v187_v49 = vpop.f32.mrb[1].mxu1 }
 0x13e   :  { %v193_v50 = vmul.f32 %v191_v41, %v181_v48  ;;  %v195_v51 = vmul.f32 %v191_v41, %v187_v49 }
 0x13f   :  { %v208_v52 = vadd.f32 %v201_v42, %v192_v46  ;;  %v210_v53 = vadd.f32 %v201_v42, %v194_v47 }
 0x140   :  { %v209_v54 = vadd.f32 %v205_v45, %v193_v50  ;;  %v211_v55 = vadd.f32 %v205_v45, %v195_v51 }
 0x141   :  { %212 = vst [vmem:[#allocation9] sm:$0xff] %v208_v52  ;;  %214 = vst [vmem:[#allocation9 + $0x10] sm:$0xff] %v210_v53 }
 0x142   :  { %213 = vst [vmem:[#allocation9 + $0x8] sm:$0xff] %v209_v54  ;;  %215 = vst [vmem:[#allocation9 + $0x18] sm:$0xff] %v211_v55 }
 0x143   :  { %390 = shalt.err (!%p387_p6)
}
 0x144   :  { %s391_s20 = scalar_lea.hbm %s492_s4, 512 }
 0x145   :  { %p392_p7 = scmp.ne.s32.totalorder %s492_s4, %s391_s20  ;;  %p395_p8 = scmp.lt.u32.totalorder %s391_s20, %s492_s4 }
 0x147   :  { %p397_p9 = pnand %p395_p8, %p392_p7 }
 0x149   :  { %400 = shalt.err (!%p397_p9)
}
 0x14a   :  { %227 = dma.vmem_to_hbm [thread:$0]  %s222_s18, 512, %s492_s4, [#allocation6], %s408_s25, %s408_s25, %s409_s26  }
 0x14b   :  { %405 = dma.done.wait [#allocation6], 512  }
 0x14c   :  { %406 = vsyncadd [#allocation6], 4294966784 }
 0x14d   :  { %231 = vsyncpa [#allocation5], 1 }
 0x14e   :  { %232 = vsyncpa [#allocation8], 1 }
 0x14f   :  { %233 = vsyncpa [#allocation6], 1 }

</bundles_post_ra>
